<compile_context>
chip_gen: v7x
topology: tpu7x:2x2x1
jax: 0.10.0
libtpu: 0.0.40
codegen_flags: <defaults>
</compile_context>

<pallas_src>
import functools
import math

import jax
import jax.numpy as jnp
from jax.experimental import pallas as pl
from jax.experimental.pallas import tpu as pltpu


def _round_up(v, m):
    return (v + m - 1) // m * m


# --------------------------------------------------------------------------- #
# Kernel: one (TB, TK) logits tile.
#   x_ref     : (TB, D)        activations tile (matmul dtype)
#   x2_ref    : (TB, 1)        f32 ||x||^2 (hoisted from the kernel)
#   w_ref     : (1, D, 2*TK)   fused RHS  [a_poincare_tile | p_poincare_tile] (matmul dtype)
#   stats_ref : (8, TK)        f32 rows: [<pp,A>, ||pp||^2, ||A||, k-factor, 0, 0, 0, 0]
#   out_ref   : (TB, TK)       logits tile (x.dtype)
# --------------------------------------------------------------------------- #
def _hyperbolic_mlr_kernel(x_ref, x2_ref, w_ref, stats_ref, out_ref, *, c, sqrt_c, tk):
    w = w_ref[0]                                             # (D, 2*TK), pre-transposed
    r = jnp.dot(x_ref[...], w, preferred_element_type=jnp.float32)   # (TB, 2*TK), one MXU pass
    ax = r[:, :tk]                                           # <x_b, A_k>
    px = r[:, tk:]                                           # <x_b, pp_k>

    pa = stats_ref[0:1, :]                                   # (1, TK)  <pp_k, A_k>
    p2 = stats_ref[1:2, :]                                   # (1, TK)  ||pp_k||^2
    a_norm = stats_ref[2:3, :]                               # (1, TK)  ||A_k||      (1 on padded lanes)
    kfac = stats_ref[3:4, :]                                 # (1, TK)  lambda_pkc*||A_k||/sqrt(c)  (0 on padded)

    x2 = x2_ref[...]                                         # (TB, 1) f32

    # mobius_addition_batch(-pp, x, c), reduced against A and against itself, with the
    # 1/ma factor folded into a single reciprocal.
    alpha = 1.0 - 2.0 * c * px + c * x2                      # (TB, TK)
    beta = 1.0 - c * p2                                      # (1, TK)
    ma = 1.0 - 2.0 * c * px + (c * c) * p2 * x2 + 1e-5       # (TB, TK)  mobius denom (+1e-5 as in hyptorch)

    q = alpha * alpha * p2 - 2.0 * alpha * beta * px + beta * beta * x2   # ||mob||^2 * ma^2
    q = jnp.maximum(q, 0.0)                                  # guard float cancellation (>= 0 exactly)

    num = (2.0 * sqrt_c) * ma * (beta * ax - alpha * pa)
    den = a_norm * (ma * ma - c * q)
    z = num * pl.reciprocal(den, approx=True)

    arsinh = jnp.log(jnp.maximum(z + jnp.sqrt(1.0 + z * z), 1e-5))   # hyptorch Arsinh (f32)
    out_ref[...] = (kfac * arsinh).astype(out_ref.dtype)


# --------------------------------------------------------------------------- #
# Batch-independent per-class preprocessing (plain XLA).  For inference heads
# with fixed parameters, call prepare_hyperbolic_mlr_params() once and cache.
# --------------------------------------------------------------------------- #
def _class_statistics(a_vals, p_vals, c):
    c = jnp.float32(c)
    sqrt_c = jnp.sqrt(c)
    p = p_vals.astype(jnp.float32)
    a = a_vals.astype(jnp.float32)

    p_norm = jnp.maximum(jnp.sqrt(jnp.sum(p * p, axis=-1, keepdims=True)), 1e-5)
    th = jnp.tanh(jnp.minimum(sqrt_c * p_norm, 15.0))        # hyptorch Tanh clamps to 15
    pp = th * p / (sqrt_c * p_norm)                          # expmap0(p_vals, c)      (K, D)

    p2 = jnp.sum(pp * pp, axis=-1, keepdims=True)            # (K, 1)
    conformal = 1.0 - c * p2
    ap = a * conformal                                       # a_poincare              (K, D)

    a_norm = jnp.sqrt(jnp.sum(ap * ap, axis=-1, keepdims=True))
    kfac = (2.0 / conformal) * a_norm / sqrt_c               # lambda_pkc * ||A|| / sqrt(c)
    pa = jnp.sum(pp * ap, axis=-1, keepdims=True)            # <pp_k, A_k>
    return pp, ap, p2, a_norm, kfac, pa


def prepare_hyperbolic_mlr_params(a_vals, p_vals, c, *, tk=None, matmul_dtype=None,
                                  vmem_limit_bytes=32 * 1024 * 1024):
    """Pack per-class operands for the kernel. Cache the result if params are reused."""
    K, D = a_vals.shape
    c = float(c)
    if matmul_dtype is None:
        # bf16 on the MXU once D is large enough that the matmul matters (v6e/v7x native rate,
        # half the DMA bytes).  Small D stays f32 (matmul is not the bottleneck there).
        matmul_dtype = jnp.bfloat16 if D >= 128 else jnp.float32
    itemsize = jnp.dtype(matmul_dtype).itemsize

    pp, ap, p2, a_norm, kfac, pa = _class_statistics(a_vals, p_vals, c)

    if tk is None:
        tk = min(512, _round_up(K, 128))
        # Keep the double-buffered fused weight slab within ~half the VMEM budget (v7x-safe).
        while tk > 128 and 2 * D * (2 * tk) * itemsize > vmem_limit_bytes // 2:
            tk -= 128
    kp = _round_up(K, tk)
    nk = kp // tk

    def to_tiles(m):  # (K, D) -> (nk, D, TK), pre-transposed per K-tile
        mt = jnp.pad(m, ((0, kp - K), (0, 0))).T             # (D, Kp)
        return mt.reshape(D, nk, tk).transpose(1, 0, 2)

    w_fused = jnp.concatenate([to_tiles(ap), to_tiles(pp)], axis=-1)    # (nk, D, 2*TK)
    w_fused = w_fused.astype(matmul_dtype)

    def row(v, pad_value=0.0):  # (K, 1) -> (Kp,)
        return jnp.pad(v[:, 0], (0, kp - K), constant_values=pad_value)

    stats = jnp.zeros((8, kp), jnp.float32)
    stats = stats.at[0].set(row(pa)).at[1].set(row(p2))
    # Padded lanes: ||A||=1 (finite denominator) and kfac=0 (zero logit) -> no 0*inf NaNs.
    stats = stats.at[2].set(row(a_norm, 1.0)).at[3].set(row(kfac, 0.0))

    return dict(w_fused=w_fused, stats=stats, tk=tk, kp=kp, K=K, D=D, c=c,
                matmul_dtype=matmul_dtype, vmem_limit_bytes=vmem_limit_bytes)


def hyperbolic_mlr_apply(x, params, *, tb=None):
    """x: (B, D) -> (B, K) logits, using precomputed class params."""
    B, D = x.shape
    assert D == params["D"]
    K, kp, tk = params["K"], params["kp"], params["tk"]
    nk = kp // tk
    c = params["c"]
    matmul_dtype = params["matmul_dtype"]

    # Batch tile: multiple of 8 sublanes.  (Raise tb for large B on v5e/v6e where VMEM allows.)
    if tb is None:
        tb = min(256, _round_up(B, 8))
    bp = _round_up(B, tb)
    nb = bp // tb

    xf = x.astype(jnp.float32)
    x2 = jnp.sum(xf * xf, axis=-1, keepdims=True)            # (B, 1) f32, hoisted out of the kernel
    xp = jnp.pad(xf, ((0, bp - B), (0, 0))).astype(matmul_dtype)
    x2p = jnp.pad(x2, ((0, bp - B), (0, 0)))

    kernel = functools.partial(_hyperbolic_mlr_kernel, c=c, sqrt_c=math.sqrt(c), tk=tk)

    out = pl.pallas_call(
        kernel,
        out_shape=jax.ShapeDtypeStruct((bp, kp), x.dtype),
        grid_spec=pltpu.PrefetchScalarGridSpec(
            num_scalar_prefetch=0,
            # Classes OUTER, batch INNER: the weight slab is fetched once per class tile and
            # stays resident while the batch streams past it.
            grid=(nk, nb),
            in_specs=[
                pl.BlockSpec((tb, D), lambda j, i: (i, 0)),             # x tile (re-streamed, small)
                pl.BlockSpec((tb, 1), lambda j, i: (i, 0)),             # ||x||^2 tile
                pl.BlockSpec((1, D, 2 * tk), lambda j, i: (j, 0, 0)),   # fused weights (resident over batch)
                pl.BlockSpec((8, tk), lambda j, i: (0, j)),             # per-class stat rows
            ],
            out_specs=pl.BlockSpec((tb, tk), lambda j, i: (i, j)),
        ),
        compiler_params=pltpu.CompilerParams(
            dimension_semantics=("parallel", "parallel"),   # batch axis shardable across TCs on v7x
            vmem_limit_bytes=params["vmem_limit_bytes"],
        ),
    )(xp, x2p, params["w_fused"], params["stats"])

    return out[:B, :K]


def hyperbolic_mlr(x, a_vals, p_vals, c, *, tb=None, tk=None, matmul_dtype=None,
                   vmem_limit_bytes=32 * 1024 * 1024):
    """x: (B, D), a_vals/p_vals: (K, D), c: python float. Returns (B, K) logits in x.dtype."""
    params = prepare_hyperbolic_mlr_params(a_vals, p_vals, c, tk=tk,
                                           matmul_dtype=matmul_dtype,
                                           vmem_limit_bytes=vmem_limit_bytes)
    return hyperbolic_mlr_apply(x, params, tb=tb)


# --------------------------------------------------------------------------- #
# Pure-JAX reference (direct, un-fused hyptorch math) for a sanity check.
# --------------------------------------------------------------------------- #
def _reference(x, a_vals, p_vals, c):
    c = jnp.float32(c)
    sqrt_c = jnp.sqrt(c)
    x = x.astype(jnp.float32)
    p = p_vals.astype(jnp.float32)
    a = a_vals.astype(jnp.float32)
    p_norm = jnp.maximum(jnp.linalg.norm(p, axis=-1, keepdims=True), 1e-5)
    pp = jnp.tanh(jnp.minimum(sqrt_c * p_norm, 15.0)) * p / (sqrt_c * p_norm)
    conformal = 1.0 - c * jnp.sum(pp * pp, axis=-1, keepdims=True)
    ap = a * conformal
    # _mobius_addition_batch(-pp, x, c)  -> (K, B, D)
    xy = jnp.einsum('kd,bd->kb', -pp, x)
    x2 = jnp.sum(pp * pp, axis=-1, keepdims=True)            # (K, 1)
    y2 = jnp.sum(x * x, axis=-1, keepdims=True)              # (B, 1)
    num = (1 + 2 * c * xy + c * y2.T)[..., None] * (-pp)[:, None, :] \
        + (1 - c * x2)[..., None] * x[None, :, :]
    den = (1 + 2 * c * xy + c ** 2 * x2 * y2.T)[..., None] + 1e-5
    mob = num / den
    lam = 2.0 / conformal[:, 0]
    a_n = jnp.linalg.norm(ap, axis=-1)
    kf = lam * a_n / sqrt_c
    nm = 2 * sqrt_c * jnp.sum(mob * ap[:, None, :], axis=-1)
    dn = a_n[:, None] * (1 - c * jnp.sum(mob * mob, axis=-1))
    z = nm / dn
    logit = kf[:, None] * jnp.log(jnp.maximum(z + jnp.sqrt(1 + z * z), 1e-5))
    return logit.T                                           # (B, K)


if __name__ == "__main__":
    B, D, K = 8, 32, 16          # batch, ball_dim, n_classes
    c = 1.0

    key = jax.random.PRNGKey(0)
    kx, ka, kp_key = jax.random.split(key, 3)

    # kaiming_uniform_(a=sqrt(5)) on (K, D): bound = 1/sqrt(D)
    bound = 1.0 / math.sqrt(D)
    a_vals = jax.random.uniform(ka, (K, D), jnp.float32, minval=-bound, maxval=bound)
    p_vals = jax.random.uniform(kp_key, (K, D), jnp.float32, minval=-bound, maxval=bound)

    # Inputs: points inside the Poincare ball (norm < 1/sqrt(c))
    x = 0.1 * jax.random.normal(kx, (B, D), jnp.float32)

    logits = hyperbolic_mlr(x, a_vals, p_vals, c)
    jax.block_until_ready(logits)

    assert logits.shape == (B, K) and logits.dtype == jnp.float32
    assert bool(jnp.all(jnp.isfinite(logits)))

    ref = _reference(x, a_vals, p_vals, c)
    err = jnp.max(jnp.abs(logits - ref) / (1e-3 + 0.05 * jnp.abs(ref)))
    assert bool(err < 1.0), f"mismatch vs pure-JAX reference: {float(err)}"
    print("KERNEL_OK")
</pallas_src>

<mosaic_0001>
module attributes {stable_mosaic.version = 11 : i64} {
  func.func @_hyperbolic_mlr_kernel(%arg0: i32, %arg1: i32, %arg2: memref<8x32xf32, #tpu.memory_space<vmem>>, %arg3: memref<8x1xf32, #tpu.memory_space<vmem>>, %arg4: memref<1x32x256xf32, #tpu.memory_space<vmem>>, %arg5: memref<8x128xf32, #tpu.memory_space<vmem>>, %arg6: memref<8x128xf32, #tpu.memory_space<vmem>>) attributes {dimension_semantics = [#tpu.dimension_semantics<parallel>, #tpu.dimension_semantics<parallel>], iteration_bounds = array<i64: 1, 1>, scalar_prefetch = 0 : i64, scratch_operands = 0 : i64, tpu.core_type = #tpu.core_type<tc>, window_params = [{transform_indices = @transform_0, window_bounds = array<i64: 8, 32>}, {transform_indices = @transform_1, window_bounds = array<i64: 8, 1>}, {transform_indices = @transform_2, window_bounds = array<i64: 1, 32, 256>}, {transform_indices = @transform_3, window_bounds = array<i64: 8, 128>}, {transform_indices = @transform_4, window_bounds = array<i64: 8, 128>}]} {
    %c0 = arith.constant 0 : index
    %c0_0 = arith.constant 0 : index
    %c0_1 = arith.constant 0 : index
    %0 = vector.load %arg4[%c0, %c0_0, %c0_1] : memref<1x32x256xf32, #tpu.memory_space<vmem>>, vector<1x32x256xf32>
    %1 = vector.shape_cast %0 : vector<1x32x256xf32> to vector<32x256xf32>
    %c0_2 = arith.constant 0 : index
    %c0_3 = arith.constant 0 : index
    %2 = vector.load %arg2[%c0_2, %c0_3] : memref<8x32xf32, #tpu.memory_space<vmem>>, vector<8x32xf32>
    %cst = arith.constant dense<0.000000e+00> : vector<8x256xf32>
    %3 = tpu.matmul %2, %1, %cst {dimension_numbers = #tpu.dot_dimension_numbers<[1], [0], [0], [1], [0, 0, 1, 1], [], []>} : vector<8x32xf32>, vector<32x256xf32>, vector<8x256xf32> -> vector<8x256xf32>
    %4 = vector.extract_strided_slice %3 {offsets = [0, 0], sizes = [8, 128], strides = [1, 1]} : vector<8x256xf32> to vector<8x128xf32>
    %5 = vector.extract_strided_slice %3 {offsets = [0, 128], sizes = [8, 128], strides = [1, 1]} : vector<8x256xf32> to vector<8x128xf32>
    %c0_4 = arith.constant 0 : index
    %c0_5 = arith.constant 0 : index
    %6 = vector.load %arg5[%c0_4, %c0_5] : memref<8x128xf32, #tpu.memory_space<vmem>>, vector<1x128xf32>
    %c1 = arith.constant 1 : index
    %c0_6 = arith.constant 0 : index
    %7 = vector.load %arg5[%c1, %c0_6] : memref<8x128xf32, #tpu.memory_space<vmem>>, vector<1x128xf32>
    %c2 = arith.constant 2 : index
    %c0_7 = arith.constant 0 : index
    %8 = vector.load %arg5[%c2, %c0_7] : memref<8x128xf32, #tpu.memory_space<vmem>>, vector<1x128xf32>
    %c3 = arith.constant 3 : index
    %c0_8 = arith.constant 0 : index
    %9 = vector.load %arg5[%c3, %c0_8] : memref<8x128xf32, #tpu.memory_space<vmem>>, vector<1x128xf32>
    %c0_9 = arith.constant 0 : index
    %c0_10 = arith.constant 0 : index
    %10 = vector.load %arg3[%c0_9, %c0_10] : memref<8x1xf32, #tpu.memory_space<vmem>>, vector<8x1xf32>
    %cst_11 = arith.constant 2.000000e+00 : f32
    %11 = vector.broadcast %cst_11 : f32 to vector<8x128xf32>
    %12 = arith.mulf %11, %5 : vector<8x128xf32>
    %cst_12 = arith.constant 1.000000e+00 : f32
    %13 = vector.broadcast %cst_12 : f32 to vector<8x128xf32>
    %14 = arith.subf %13, %12 : vector<8x128xf32>
    %cst_13 = arith.constant 1.000000e+00 : f32
    %15 = vector.broadcast %cst_13 : f32 to vector<8x1xf32>
    %16 = arith.mulf %15, %10 : vector<8x1xf32>
    %17 = vector.broadcast %16 : vector<8x1xf32> to vector<8x128xf32>
    %18 = arith.addf %14, %17 : vector<8x128xf32>
    %cst_14 = arith.constant 1.000000e+00 : f32
    %19 = vector.broadcast %cst_14 : f32 to vector<1x128xf32>
    %20 = arith.mulf %19, %7 : vector<1x128xf32>
    %cst_15 = arith.constant 1.000000e+00 : f32
    %21 = vector.broadcast %cst_15 : f32 to vector<1x128xf32>
    %22 = arith.subf %21, %20 : vector<1x128xf32>
    %cst_16 = arith.constant 2.000000e+00 : f32
    %23 = vector.broadcast %cst_16 : f32 to vector<8x128xf32>
    %24 = arith.mulf %23, %5 : vector<8x128xf32>
    %cst_17 = arith.constant 1.000000e+00 : f32
    %25 = vector.broadcast %cst_17 : f32 to vector<8x128xf32>
    %26 = arith.subf %25, %24 : vector<8x128xf32>
    %cst_18 = arith.constant 1.000000e+00 : f32
    %27 = vector.broadcast %cst_18 : f32 to vector<1x128xf32>
    %28 = arith.mulf %27, %7 : vector<1x128xf32>
    %29 = vector.broadcast %28 : vector<1x128xf32> to vector<8x128xf32>
    %30 = vector.broadcast %10 : vector<8x1xf32> to vector<8x128xf32>
    %31 = arith.mulf %29, %30 : vector<8x128xf32>
    %32 = arith.addf %26, %31 : vector<8x128xf32>
    %cst_19 = arith.constant 9.99999974E-6 : f32
    %33 = vector.broadcast %cst_19 : f32 to vector<8x128xf32>
    %34 = arith.addf %32, %33 : vector<8x128xf32>
    %35 = arith.mulf %18, %18 : vector<8x128xf32>
    %36 = vector.broadcast %7 : vector<1x128xf32> to vector<8x128xf32>
    %37 = arith.mulf %35, %36 : vector<8x128xf32>
    %cst_20 = arith.constant 2.000000e+00 : f32
    %38 = vector.broadcast %cst_20 : f32 to vector<8x128xf32>
    %39 = arith.mulf %38, %18 : vector<8x128xf32>
    %40 = vector.broadcast %22 : vector<1x128xf32> to vector<8x128xf32>
    %41 = arith.mulf %39, %40 : vector<8x128xf32>
    %42 = arith.mulf %41, %5 : vector<8x128xf32>
    %43 = arith.subf %37, %42 : vector<8x128xf32>
    %44 = arith.mulf %22, %22 : vector<1x128xf32>
    %45 = vector.broadcast %44 : vector<1x128xf32> to vector<8x128xf32>
    %46 = vector.broadcast %10 : vector<8x1xf32> to vector<8x128xf32>
    %47 = arith.mulf %45, %46 : vector<8x128xf32>
    %48 = arith.addf %43, %47 : vector<8x128xf32>
    %cst_21 = arith.constant 0.000000e+00 : f32
    %49 = vector.broadcast %cst_21 : f32 to vector<8x128xf32>
    %50 = arith.maximumf %48, %49 : vector<8x128xf32>
    %cst_22 = arith.constant 2.000000e+00 : f32
    %51 = vector.broadcast %cst_22 : f32 to vector<8x128xf32>
    %52 = arith.mulf %51, %34 : vector<8x128xf32>
    %53 = vector.broadcast %22 : vector<1x128xf32> to vector<8x128xf32>
    %54 = arith.mulf %53, %4 : vector<8x128xf32>
    %55 = vector.broadcast %6 : vector<1x128xf32> to vector<8x128xf32>
    %56 = arith.mulf %18, %55 : vector<8x128xf32>
    %57 = arith.subf %54, %56 : vector<8x128xf32>
    %58 = arith.mulf %52, %57 : vector<8x128xf32>
    %59 = arith.mulf %34, %34 : vector<8x128xf32>
    %cst_23 = arith.constant 1.000000e+00 : f32
    %60 = vector.broadcast %cst_23 : f32 to vector<8x128xf32>
    %61 = arith.mulf %60, %50 : vector<8x128xf32>
    %62 = arith.subf %59, %61 : vector<8x128xf32>
    %63 = vector.broadcast %8 : vector<1x128xf32> to vector<8x128xf32>
    %64 = arith.mulf %63, %62 : vector<8x128xf32>
    %65 = tpu.reciprocal %64 {approx = true} : vector<8x128xf32> -> vector<8x128xf32>
    %66 = arith.mulf %58, %65 : vector<8x128xf32>
    %67 = arith.mulf %66, %66 : vector<8x128xf32>
    %cst_24 = arith.constant 1.000000e+00 : f32
    %68 = vector.broadcast %cst_24 : f32 to vector<8x128xf32>
    %69 = arith.addf %68, %67 : vector<8x128xf32>
    %70 = math.sqrt %69 : vector<8x128xf32>
    %71 = arith.addf %66, %70 : vector<8x128xf32>
    %cst_25 = arith.constant 9.99999974E-6 : f32
    %72 = vector.broadcast %cst_25 : f32 to vector<8x128xf32>
    %73 = arith.maximumf %71, %72 : vector<8x128xf32>
    %74 = math.log %73 : vector<8x128xf32>
    %75 = vector.broadcast %9 : vector<1x128xf32> to vector<8x128xf32>
    %76 = arith.mulf %75, %74 : vector<8x128xf32>
    %c0_26 = arith.constant 0 : index
    %c0_27 = arith.constant 0 : index
    %77 = vector.load %arg6[%c0_26, %c0_27] : memref<8x128xf32, #tpu.memory_space<vmem>>, vector<8x128xf32>
    tpu.vector_store %arg6[%c0_26, %c0_27], %76 {strides = array<i32>} : memref<8x128xf32, #tpu.memory_space<vmem>>, vector<8x128xf32>,
    return
  }
  func.func @transform_0(%arg0: i32, %arg1: i32) -> (i32, i32) {
    %c0_i32 = arith.constant 0 : i32
    %c0_i32_0 = arith.constant 0 : i32
    return %arg1, %c0_i32 : i32, i32
  }
  func.func @transform_1(%arg0: i32, %arg1: i32) -> (i32, i32) {
    %c0_i32 = arith.constant 0 : i32
    %c0_i32_0 = arith.constant 0 : i32
    return %arg1, %c0_i32 : i32, i32
  }
  func.func @transform_2(%arg0: i32, %arg1: i32) -> (i32, i32, i32) {
    %c0_i32 = arith.constant 0 : i32
    %c0_i32_0 = arith.constant 0 : i32
    %c0_i32_1 = arith.constant 0 : i32
    return %arg0, %c0_i32, %c0_i32_0 : i32, i32, i32
  }
  func.func @transform_3(%arg0: i32, %arg1: i32) -> (i32, i32) {
    %c0_i32 = arith.constant 0 : i32
    %c0_i32_0 = arith.constant 0 : i32
    return %c0_i32, %arg0 : i32, i32
  }
  func.func @transform_4(%arg0: i32, %arg1: i32) -> (i32, i32) {
    %c0_i32 = arith.constant 0 : i32
    return %arg1, %arg0 : i32, i32
  }
}

</mosaic_0001>

<bundles_post_ra>
// kernel: tpu_custom_call.1
= control target key start
LH: loop header
LB: loop body
LE: loop exit
PB: predicated region body
PF: predicated region fallthrough
CT: control target
= control target key end

     0   :  { %9 = vsyncpa [#allocation3], 0  ;;  %s353_s0 = inlined_call_operand.vmem [shape: f32[8,32], index: 0, kind: input, shape index: {}]   ;;  %s354_s1 = inlined_call_operand.vmem [shape: f32[8,1], index: 1, kind: input, shape index: {}]   ;;  %s355_s2 = inlined_call_operand.hbm [shape: f32[1,32,256], index: 2, kind: input, shape index: {}]   ;;  %s356_s3 = inlined_call_operand.vmem [shape: f32[8,128], index: 3, kind: input, shape index: {}]   ;;  %s357_s4 = inlined_call_operand.hbm [shape: f32[8,128], index: 4, kind: output, shape index: {}]  }
   0x1   :  { %10 = vsyncpa [#allocation4], 0  ;;  %s280_s15 = smov [#allocation2]   ;;  %s232_s19 = scalar_lea.hbm %s355_s2, 1024 }
   0x2   :  { %s20_s16 = sshll.u32 %s280_s15, 4  ;;  %p233_p0 = scmp.ne.s32.totalorder %s355_s2, %s232_s19  ;;  %s21_s16 = int_to_ptr.vmem [resolvable:$true] %s20_s16 }
   0x3   :  { %p236_p1 = scmp.lt.u32.totalorder %s232_s19, %s355_s2 }
   0x5   :  { %p238_p2 = pnand %p236_p1, %p233_p0 }
   0x7   :  { %241 = shalt.err (!%p238_p2)
}
   0x8   :  { %s242_s24 = scalar_lea.vmem %s21_s16, 1024  ;;  %p247_p4 = scmp.lt.s32.totalorder %s21_s16, %s21_s16 }
   0x9   :  { %p243_p3 = scmp.ne.s32.totalorder %s21_s16, %s242_s24  ;;  %p248_p5 = scmp.lt.s32.totalorder %s242_s24, %s242_s24 }
   0xb   :  { %p249_p6 = por %p248_p5, %p247_p4 }
   0xd   :  { %p250_p7 = pnand %p249_p6, %p243_p3 }
   0xf   :  { %253 = shalt.err (!%p250_p7)
}
  0x10   :  { %s281_s25 = smov 256   ;;  %s282_s26 = smov 16  }
  0x11   :  { %26 = dma.hbm_to_vmem [thread:$0]  %s355_s2, 1024, %s21_s16, [#allocation3], %s281_s25, %s281_s25, %s282_s26  }
  0x12   :  { %276 = dma.done.wait [#allocation3], 1024  }
  0x13   :  { %277 = vsyncadd [#allocation3], 4294966272  ;;  %v283_v0 = vmov 0.0   ;;  %v284_v1 = vmov 0   ;;  %v33_v2 = vld [vmem:[#allocation2 + $0x8] sm:$0xff]  ;;  %v35_v3 = vld [vmem:[#allocation2 + $0x18] sm:$0xff]  ;;  %v130_v16 = vlaneseq }
  0x14   :  { %109 = vmatprep.mubr.f32.mxu0 %v283_v0  ;;  %225 = vset.pattern.permute.xlu0 %v284_v1  ;;  %v32_v4 = vld [vmem:[#allocation2] sm:$0xff]  ;;  %v211_v5 = vpack.c.bf16 %v35_v3, %v33_v2  ;;  %v34_v6 = vld [vmem:[#allocation2 + $0x10] sm:$0xff]  ;;  %v37_v7 = vld [vmem:[#allocation2 + $0x28] sm:$0xff]  ;;  %vm41_vm0 = vcmask 261120   ;;  %s285_s12 = smov [#allocation5]  }
  0x15   :  { %v39_v8 = vld [vmem:[#allocation2 + $0x38] sm:$0xff]  ;;  %v213_v9 = vpack.c.bf16 %v34_v6, %v32_v4  ;;  %v36_v11 = vld [vmem:[#allocation2 + $0x20] sm:$0xff]  ;;  %v38_v12 = vld [vmem:[#allocation2 + $0x30] sm:$0xff]  ;;  %v131_v17 = vshrl.u32 %v130_v16, 7  ;;  %s198_s13 = sshll.u32 %s285_s12, 4  ;;  %s199_s13 = int_to_ptr.vmem [resolvable:$true] %s198_s13 }
  0x16   :  { %v215_v10 = vpack.c.bf16 %v39_v8, %v37_v7  ;;  %212 = vmatprep.subr.bf16.mxu0 %v211_v5  ;;  %v120_v13 = vld [vmem:[%s354_s1] sm:$0xff]  ;;  %v217_v14 = vpack.c.bf16 %v38_v12, %v36_v11  ;;  %s254_s14 = scalar_lea.vmem %s199_s13, 128  ;;  %p259_p9 = scmp.lt.s32.totalorder %s199_s13, %s199_s13 }
  0x17   :  { %214 = vmatpush1.bf16.msra.mxu0 %v213_v9  ;;  %125 = vperm.xlu0 %225, %v120_v13   ;;  %v40_v15 = vld [vmem:[%s353_s0] sm:$0xff]  ;;  %v132_v19 = vsub.s32 0, %v131_v17  ;;  %p255_p8 = scmp.ne.s32.totalorder %s199_s13, %s254_s14  ;;  %p260_p10 = scmp.lt.s32.totalorder %s254_s14, %s254_s14 }
  0x18   :  { %216 = vmatprep.subr.bf16.mxu0 %v215_v10  ;;  %v117_v18 = vld [vmem:[%s356_s3 + $0x1] sm:$0x1]  ;;  %v208_v29 = vld [vmem:[%s356_s3] ss:$0 sm:$0xff]  ;;  %v209_v50 = vld [vmem:[%s356_s3 + $0x2] ss:$0 sm:$0xff] }
  0x19   :  { %v133_v20 = vrot.slane %v117_v18, %v132_v19  ;;  %v129_v21 = vsub.f32 1.0, %v117_v18  ;;  %v210_v1 = vld [vmem:[%s356_s3 + $0x3] ss:$0 sm:$0xff]  ;;  %p261_p11 = por %p260_p10, %p259_p9 }
  0x1b   :  { %218 = vmatpush1.bf16.msra.mxu0 %v217_v14  ;;  %v143_v27 = vrot.slane %v129_v21, %v132_v19  ;;  %v147_v32 = vmul.f32 %v129_v21, %v129_v21  ;;  %p262_p12 = pnand %p261_p11, %p255_p8 }
  0x1d   :  { %v151_v39 = vrot.slane %v147_v32, %v132_v19 }
  0x1e   :  { %207 = vmatmul.mubr.msk.f32.vlgmr.msra.gmra.mrb[0].mxu0 %vm41_vm0, %v40_v15 }
  0x96   :  { %v126_v22 = vpop.permute.xlu0 %125 }
  0x97   :  { %v134_v26 = vmul.f32 %v133_v20, %v126_v22  ;;  %v152_v46 = vmul.f32 %v151_v39, %v126_v22 }
  0xf1   :  { %v111_v23 = vpop.f32.mrb[0].mxu0 }
  0xf2   :  { %v113_v24 = vpop.f32.mrb[1].mxu0  ;;  %v156_v33 = vmul.f32 %v143_v27, %v111_v23 }
  0xf3   :  { %v121_v25 = vmul.f32 2.0, %v113_v24 }
  0xf5   :  { %v122_v28 = vsub.f32 1.0, %v121_v25 }
  0xf7   :  { %v128_v30 = vadd.f32 %v126_v22, %v122_v28  ;;  %v135_v31 = vadd.f32 %v134_v26, %v122_v28 }
  0xf9   :  { %v136_v34 = vadd.f32 1e-05, %v135_v31  ;;  %v137_v35 = vmul.f32 %v128_v30, %v128_v30  ;;  %v139_v36 = vmul.f32 2.0, %v128_v30  ;;  %v161_v37 = vmul.f32 %v208_v29, %v128_v30 }
  0xfb   :  { %v144_v38 = vmul.f32 %v143_v27, %v139_v36  ;;  %v155_v40 = vmul.f32 2.0, %v136_v34  ;;  %v162_v41 = vsub.f32 %v156_v33, %v161_v37  ;;  %v138_v42 = vmul.f32 %v137_v35, %v133_v20 }
  0xfc   :  { %v164_v49 = vmul.f32 %v136_v34, %v136_v34 }
  0xfd   :  { %v145_v43 = vmul.f32 %v144_v38, %v113_v24  ;;  %v163_v44 = vmul.f32 %v162_v41, %v155_v40 }
  0xff   :  { %v146_v45 = vsub.f32 %v138_v42, %v145_v43 }
 0x101   :  { %v153_v47 = vadd.f32 %v152_v46, %v146_v45 }
 0x103   :  { %v154_v48 = vmax.f32 %v153_v47, 0.0 }
 0x105   :  { %v165_v51 = vsub.f32 %v164_v49, %v154_v48 }
 0x107   :  { %v170_v52 = vmul.f32 %v209_v50, %v165_v51 }
 0x109   :  { %226 = vrcp.f32 %v170_v52 }
 0x113   :  { %v227_v53 = vpop.eup %226 }
 0x114   :  { %v172_v54 = vmul.f32 %v227_v53, %v163_v44 }
 0x116   :  { %v173_v55 = vmul.f32 %v172_v54, %v172_v54 }
 0x118   :  { %v174_v56 = vadd.f32 1.0, %v173_v55 }
 0x11a   :  { %228 = vrsqrt.f32 %v174_v56  ;;  %vm177_vm1 = vcmp.eq.f32.partialorder %v174_v56, inf  ;;  %v180_v59 = vand.u32 2147483648, %v174_v56  ;;  %vm179_vm2 = vcmp.eq.f32.partialorder %v174_v56, 0.0 }
 0x124   :  { %v229_v57 = vpop.eup %228 }
 0x125   :  { %v176_v58 = vmul.f32 %v229_v57, %v174_v56 }
 0x127   :  { %v178_v60 = vsel %vm177_vm1, %v174_v56, %v176_v58 }
 0x128   :  { %v181_v61 = vsel %vm179_vm2, %v180_v59, %v178_v60 }
 0x129   :  { %v182_v62 = vadd.f32 %v181_v61, %v172_v54 }
 0x12b   :  { %v183_v63 = vmax.f32 %v182_v62, 1e-05 }
 0x12d   :  { %230 = vlog2.f32 %v183_v63 }
 0x137   :  { %v231_v0 = vpop.eup %230 }
 0x138   :  { %v185_v2 = vmul.f32 0.6931472, %v231_v0 }
 0x13a   :  { %v190_v3 = vmul.f32 %v210_v1, %v185_v2 }
 0x13c   :  { %191 = vst [vmem:[#allocation5] sm:$0xff] %v190_v3 }
 0x13d   :  { %265 = shalt.err (!%p262_p12)
}
 0x13e   :  { %s266_s17 = scalar_lea.hbm %s357_s4, 128 }
 0x13f   :  { %p267_p13 = scmp.ne.s32.totalorder %s357_s4, %s266_s17  ;;  %p270_p0 = scmp.lt.u32.totalorder %s266_s17, %s357_s4 }
 0x141   :  { %p272_p1 = pnand %p270_p0, %p267_p13 }
 0x143   :  { %275 = shalt.err (!%p272_p1)
}
 0x144   :  { %201 = dma.vmem_to_hbm [thread:$0]  %s199_s13, 128, %s357_s4, [#allocation4]  }
 0x145   :  { %278 = dma.done.wait [#allocation4], 128  }
 0x146   :  { %279 = vsyncadd [#allocation4], 4294967168 }
 0x147   :  { %205 = vsyncpa [#allocation3], 1 }
 0x148   :  { %206 = vsyncpa [#allocation4], 1 }

</bundles_post_ra>
